<compile_context>
chip_gen: v5e
topology: v5e:2x2
jax: 0.10.0
libtpu: 0.0.40
codegen_flags: <defaults>
</compile_context>

<pallas_src>
import jax
import jax.numpy as jnp
from jax import lax
from jax.experimental import pallas as pl
from jax.experimental.pallas import tpu as pltpu


def _patch_embed_kernel(p_ref, w_ref, posb_ref, out_ref):
    """Fused patch embedding, whole batch in one MXU pass.

    p_ref:    (B*N, K) bf16  im2col patches, columns ordered b-major then n
    w_ref:    (E, K)   bf16  conv weight reshaped
    posb_ref: (E, B*N) f32   position_encoding[1:] in conv-native (chan, spatial)
                             order with conv bias folded in, tiled across batch
    out_ref:  (E, B*N) f32   conv output (+bias+pos) in conv-native order
    """
    # Conv2d(kernel=stride=P) == matmul: y[e, bn] = sum_k w[e, k] * p[bn, k]
    y = lax.dot_general(w_ref[...], p_ref[...], (((1,), (1,)), ((), ())),
                        preferred_element_type=jnp.float32)       # (E, B*N) f32
    out_ref[...] = y + posb_ref[...]


def patch_embedding(x, params, patch_size):
    """x: (B, C, H, W) float32.  Returns (B, N+1, E) matching the torch module."""
    B, C, H, W = x.shape
    P = patch_size
    E = params["w"].shape[0]
    Hp, Wp = H // P, W // P
    N = Hp * Wp
    K = C * P * P
    BN = B * N

    # --- wrapper-side layout plumbing (cheap / fusible XLA ops, no compute) ---
    # im2col: (B, C, H, W) -> (B*N, K), patch-flatten order (c, ph, pw) matching
    # the conv weight's (E, C, P, P) row-major flatten.  bf16 for the MXU.
    patches = x.reshape(B, C, Hp, P, Wp, P)
    patches = patches.transpose(0, 2, 4, 1, 3, 5).reshape(BN, K)
    patches = patches.astype(jnp.bfloat16)

    w2d = params["w"].reshape(E, K).astype(jnp.bfloat16)          # (E, K)

    pos = params["pos"]                                           # (N+1, E)
    # position_encoding rows 1..N expressed in the conv's channel-major order
    # (raw row-major reshape), with the conv bias folded in (both parameter-only,
    # computed once per forward instead of B times in-kernel), tiled across the
    # batch so the in-kernel add is a single full-width VPU add.
    posb = pos[1:, :].reshape(E, N) + params["b"].reshape(E, 1)   # (E, N)
    posb = jnp.tile(posb, (1, B))                                 # (E, B*N)

    y = pl.pallas_call(
        _patch_embed_kernel,
        out_shape=jax.ShapeDtypeStruct((E, BN), jnp.float32),
        grid=(1,),
        in_specs=[
            pl.BlockSpec((BN, K), lambda i: (0, 0)),   # im2col patches (bf16)
            pl.BlockSpec((E, K), lambda i: (0, 0)),    # conv weight (bf16)
            pl.BlockSpec((E, BN), lambda i: (0, 0)),   # pos enc + bias (f32)
        ],
        out_specs=pl.BlockSpec((E, BN), lambda i: (0, 0)),
        compiler_params=pltpu.CompilerParams(
            dimension_semantics=("arbitrary",),
            # let XLA fuse the im2col reshape/transpose/convert into the
            # operand fetch so the patches array is never materialized in HBM
            allow_input_fusion=[True, False, False],
        ),
    )(patches, w2d, posb)

    # torch: x.view(b, w*h, e) on the contiguous per-batch (E, N) conv output is
    # a raw row-major reinterpretation -> split batches + free reshape here.
    patch_rows = y.reshape(E, B, N).transpose(1, 0, 2).reshape(B, N, E)

    # cls + position_encoding[0] is batch-invariant: compute once, broadcast.
    cls_row = params["cls"].reshape(1, 1, E) + pos[0].reshape(1, 1, E)
    cls_row = jnp.broadcast_to(cls_row, (B, 1, E))

    return jnp.concatenate([cls_row, patch_rows], axis=1)


def reference(x, params, patch_size):
    """Pure-JAX f32 replica of the PyTorch forward, for verification."""
    B = x.shape[0]
    E = params["w"].shape[0]
    P = patch_size
    y = lax.conv_general_dilated(
        x, params["w"], window_strides=(P, P), padding="VALID",
        dimension_numbers=("NCHW", "OIHW", "NCHW"))
    y = y + params["b"].reshape(1, E, 1, 1)
    b, e, w, h = y.shape
    yv = y.reshape(b, w * h, e)                      # torch .view semantics
    cls = jnp.broadcast_to(params["cls"], (b, 1, e))  # repeat_interleave(dim=0)
    out = jnp.concatenate([cls, yv], axis=1)
    return out + params["pos"]


if __name__ == "__main__":
    # Small shapes consistent with the module: in_channels=4, patch_size=4,
    # img_size=16 -> 16 patches, emb_size=32, batch=2.
    B, C, IMG, P, E = 2, 4, 16, 4, 32
    N = (IMG // P) ** 2

    root = jax.random.PRNGKey(0)
    kx, kw, kb, kcls, kpos = jax.random.split(root, 5)
    x = jax.random.normal(kx, (B, C, IMG, IMG), dtype=jnp.float32)
    params = {
        "w": 0.05 * jax.random.normal(kw, (E, C, P, P), dtype=jnp.float32),
        "b": 0.05 * jax.random.normal(kb, (E,), dtype=jnp.float32),
        "cls": jax.random.uniform(kcls, (1, 1, E), dtype=jnp.float32),   # torch.rand
        "pos": jax.random.normal(kpos, (N + 1, E), dtype=jnp.float32),   # torch.randn
    }

    out = jax.block_until_ready(patch_embedding(x, params, P))
    ref = jax.block_until_ready(reference(x, params, P))

    assert out.shape == (B, N + 1, E), out.shape
    # bf16 MXU operands (f32 accumulation) vs f32 reference -> widened tolerance.
    assert jnp.allclose(out, ref, rtol=3e-2, atol=3e-2), \
        float(jnp.max(jnp.abs(out - ref)))

    print("KERNEL_OK")
</pallas_src>

<mosaic_0001>
module attributes {stable_mosaic.version = 11 : i64} {
  func.func @_patch_embed_kernel(%arg0: i32, %arg1: memref<32x64xbf16, #tpu.memory_space<vmem>>, %arg2: memref<32x64xbf16, #tpu.memory_space<vmem>>, %arg3: memref<32x32xf32, #tpu.memory_space<vmem>>, %arg4: memref<32x32xf32, #tpu.memory_space<vmem>>) attributes {dimension_semantics = [#tpu.dimension_semantics<arbitrary>], iteration_bounds = array<i64: 1>, scalar_prefetch = 0 : i64, scratch_operands = 0 : i64, tpu.core_type = #tpu.core_type<tc>, window_params = [{pipeline_mode = #tpu.pipeline_mode<synchronous>, transform_indices = @transform_0, window_bounds = array<i64: 32, 64>}, {pipeline_mode = #tpu.pipeline_mode<synchronous>, transform_indices = @transform_1, window_bounds = array<i64: 32, 64>}, {pipeline_mode = #tpu.pipeline_mode<synchronous>, transform_indices = @transform_2, window_bounds = array<i64: 32, 32>}, {pipeline_mode = #tpu.pipeline_mode<synchronous>, transform_indices = @transform_3, window_bounds = array<i64: 32, 32>}]} {
    %c0 = arith.constant 0 : index
    %c0_0 = arith.constant 0 : index
    %0 = vector.load %arg2[%c0, %c0_0] : memref<32x64xbf16, #tpu.memory_space<vmem>>, vector<32x64xbf16>
    %c0_1 = arith.constant 0 : index
    %c0_2 = arith.constant 0 : index
    %1 = vector.load %arg1[%c0_1, %c0_2] : memref<32x64xbf16, #tpu.memory_space<vmem>>, vector<32x64xbf16>
    %cst = arith.constant dense<0.000000e+00> : vector<32x32xf32>
    %2 = tpu.matmul %0, %1, %cst {dimension_numbers = #tpu.dot_dimension_numbers<[1], [1], [0], [0], [0, 0, 1, 0], [], []>} : vector<32x64xbf16>, vector<32x64xbf16>, vector<32x32xf32> -> vector<32x32xf32>
    %c0_3 = arith.constant 0 : index
    %c0_4 = arith.constant 0 : index
    %3 = vector.load %arg3[%c0_3, %c0_4] : memref<32x32xf32, #tpu.memory_space<vmem>>, vector<32x32xf32>
    %4 = arith.addf %2, %3 : vector<32x32xf32>
    %c0_5 = arith.constant 0 : index
    %c0_6 = arith.constant 0 : index
    %5 = vector.load %arg4[%c0_5, %c0_6] : memref<32x32xf32, #tpu.memory_space<vmem>>, vector<32x32xf32>
    tpu.vector_store %arg4[%c0_5, %c0_6], %4 {strides = array<i32>} : memref<32x32xf32, #tpu.memory_space<vmem>>, vector<32x32xf32>,
    return
  }
  func.func @transform_0(%arg0: i32) -> (i32, i32) {
    %c0_i32 = arith.constant 0 : i32
    %c0_i32_0 = arith.constant 0 : i32
    %c0_i32_1 = arith.constant 0 : i32
    return %c0_i32, %c0_i32_0 : i32, i32
  }
  func.func @transform_1(%arg0: i32) -> (i32, i32) {
    %c0_i32 = arith.constant 0 : i32
    %c0_i32_0 = arith.constant 0 : i32
    %c0_i32_1 = arith.constant 0 : i32
    return %c0_i32, %c0_i32_0 : i32, i32
  }
  func.func @transform_2(%arg0: i32) -> (i32, i32) {
    %c0_i32 = arith.constant 0 : i32
    %c0_i32_0 = arith.constant 0 : i32
    %c0_i32_1 = arith.constant 0 : i32
    return %c0_i32, %c0_i32_0 : i32, i32
  }
  func.func @transform_3(%arg0: i32) -> (i32, i32) {
    %c0_i32 = arith.constant 0 : i32
    %c0_i32_0 = arith.constant 0 : i32
    %c0_i32_1 = arith.constant 0 : i32
    return %c0_i32, %c0_i32_0 : i32, i32
  }
}

</mosaic_0001>

<bundles_post_ra>
// kernel: tpu_custom_call.1
= control target key start
LH: loop header
LB: loop body
LE: loop exit
PB: predicated region body
PF: predicated region fallthrough
CT: control target
= control target key end

     0   :  { %8 = vsyncpa [#allocation3], 0  ;;  %s336_s0 = inlined_call_operand.hbm [shape: bf16[32,64], index: 0, kind: input, shape index: {}]   ;;  %s337_s1 = inlined_call_operand.hbm [shape: bf16[32,64], index: 1, kind: input, shape index: {}]   ;;  %s338_s2 = inlined_call_operand.hbm [shape: f32[32,32], index: 2, kind: input, shape index: {}]   ;;  %s339_s3 = inlined_call_operand.hbm [shape: f32[32,32], index: 3, kind: output, shape index: {}]  }
   0x1   :  { %9 = vsyncpa [#allocation6], 0 }
   0x2   :  { %10 = vsyncpa [#allocation4], 0  ;;  %s28_s14 = sshll.u32 %s337_s1, 4  ;;  %s286_s15 = smov [#allocation5]   ;;  %s29_s14 = int_to_ptr.hbm [resolvable:$true] %s28_s14 }
   0x3   :  { %s30_s16 = sshll.u32 %s286_s15, 4  ;;  %s15_s19 = sshll.u32 %s336_s0, 4  ;;  %s31_s16 = int_to_ptr.vmem [resolvable:$true] %s30_s16  ;;  %s16_s19 = int_to_ptr.hbm [resolvable:$true] %s15_s19 }
   0x4   :  { %s287_s20 = smov 64   ;;  %s288_s21 = smov 4  }
   0x5   :  { %36 = dma.hbm_to_vmem [thread:$0]  %s29_s14, 256, %s31_s16, [#allocation6], %s287_s20, %s287_s20, %s288_s21  }
   0x6   :  { %s289_s22 = smov [#allocation2]   ;;  %s41_s26 = sshll.u32 %s338_s2, 4  ;;  %s42_s26 = int_to_ptr.hbm [resolvable:$true] %s41_s26 }
   0x7   :  { %s17_s23 = sshll.u32 %s289_s22, 4  ;;  %s290_s1 = smov [#allocation7]   ;;  %s18_s23 = int_to_ptr.vmem [resolvable:$true] %s17_s23 }
   0x8   :  { %23 = dma.hbm_to_vmem [thread:$0]  %s16_s19, 256, %s18_s23, [#allocation3], %s287_s20, %s287_s20, %s288_s21  }
   0x9   :  { %s43_s27 = sshll.u32 %s290_s1, 4  ;;  %s291_s28 = smov 128   ;;  %s44_s27 = int_to_ptr.vmem [resolvable:$true] %s43_s27 }
   0xa   :  { %s292_s29 = smov 8  }
   0xb   :  { %49 = dma.hbm_to_vmem [thread:$0]  %s42_s26, 512, %s44_s27, [#allocation6], %s291_s28, %s291_s28, %s292_s29  }
   0xc   :  { %280 = dma.done.wait [#allocation3], 256  }
   0xd   :  { %281 = vsyncadd [#allocation3], 4294967040 }
   0xe   :  { %282 = dma.done.wait [#allocation6], 768  }
   0xf   :  { %283 = vsyncadd [#allocation6], 4294966528  ;;  %vm95_vm0 = vcmask 523264   ;;  %v173_v0 = vld [vmem:[#allocation2 + $0x8] sm:$0xff]  ;;  %v172_v2 = vld [vmem:[#allocation2] sm:$0xff]  ;;  %vm127_vm1 = vcmask 261120  }
  0x10   :  { %v106_v1 = vsel %vm95_vm0, %v173_v0, 0  ;;  %v103_v3 = vsel %vm95_vm0, %v172_v2, 0  ;;  %v170_v4 = vld [vmem:[#allocation5] sm:$0xff]  ;;  %v171_v5 = vld [vmem:[#allocation5 + $0x8] sm:$0xff]  ;;  %v71_v6 = vld [vmem:[#allocation7] sm:$0xff]  ;;  %s293_s0 = smov [#allocation8]  }
  0x11   :  { %114 = vmatpush.bf16.xpose.msra.mxu0 %v106_v1  ;;  %174 = vmatpush.bf16.xpose.msra.mxu1 %v106_v1  ;;  %v73_v7 = vld [vmem:[#allocation7 + $0x10] sm:$0xff]  ;;  %v72_v12 = vld [vmem:[#allocation7 + $0x8] sm:$0xff]  ;;  %v74_v13 = vld [vmem:[#allocation7 + $0x18] sm:$0xff]  ;;  %s136_s2 = sshll.u32 %s293_s0, 4  ;;  %s138_s5 = sshll.u32 %s339_s3, 4  ;;  %s137_s2 = int_to_ptr.vmem [resolvable:$true] %s136_s2  ;;  %s139_s5 = int_to_ptr.hbm [resolvable:$true] %s138_s5 }
  0x19   :  { %115 = vmatpush.bf16.xpose.msra.mxu0 %v103_v3  ;;  %175 = vmatpush.bf16.xpose.msra.mxu1 %v103_v3 }
  0x20   :  { %168 = vmatmul.msk.bf16.vlgmr.msra.gmra.mxu0 %vm95_vm0, %v170_v4  ;;  %169 = vmatmul.msk.bf16.vlgmr.msra.gmra.mxu1 %vm95_vm0, %v171_v5 }
  0x9d   :  { %v117_v8 = vpop.f32.mrf.mxu0  ;;  %v122_v9 = vpop.f32.mrf.mxu1 }
  0x9e   :  { %v118_v10 = vadd.f32 %v117_v8, %v71_v6  ;;  %v123_v11 = vadd.f32 %v122_v9, %v73_v7 }
  0xa0   :  { %128 = vst.msk [vmem:[#allocation8] sm:$0xff] %vm127_vm1, %v118_v10 }
  0xa1   :  { %130 = vst.msk [vmem:[#allocation8 + $0x10] sm:$0xff] %vm127_vm1, %v123_v11 }
  0xa5   :  { %v119_v14 = vpop.f32.mrf.mxu0  ;;  %v124_v15 = vpop.f32.mrf.mxu1 }
  0xa6   :  { %v120_v16 = vadd.f32 %v119_v14, %v72_v12  ;;  %v125_v17 = vadd.f32 %v124_v15, %v74_v13 }
  0xa8   :  { %129 = vst.msk [vmem:[#allocation8 + $0x8] sm:$0xff] %vm127_vm1, %v120_v16 }
  0xa9   :  { %131 = vst.msk [vmem:[#allocation8 + $0x18] sm:$0xff] %vm127_vm1, %v125_v17 }
  0xaa   :  { %144 = dma.vmem_to_hbm [thread:$0]  %s137_s2, 512, %s139_s5, [#allocation4], %s291_s28, %s291_s28, %s292_s29  }
  0xab   :  { %284 = dma.done.wait [#allocation4], 512  }
  0xac   :  { %285 = vsyncadd [#allocation4], 4294966784 }
  0xad   :  { %149 = vsyncpa [#allocation3], 1 }
  0xae   :  { %150 = vsyncpa [#allocation6], 1 }
  0xaf   :  { %151 = vsyncpa [#allocation4], 1 }

</bundles_post_ra>
